<compile_context>
chip_gen: v6e
topology: v6e:2x2x1
jax: 0.10.0
libtpu: 0.0.40
codegen_flags: <defaults>
</compile_context>

<pallas_src>
import functools

import jax
import jax.numpy as jnp
from jax.experimental import pallas as pl
from jax.experimental.pallas import tpu as pltpu

_LANE = 128   # lane width: last dim of every block must be a multiple of this
_ROW = 16     # row granularity for batch tiles (bf16 sublane packing: 16x128)


def _round_up(n, m):
    return ((n + m - 1) // m) * m


def _vmem_budget_bytes():
    """Per-generation usable VMEM budget (~75% of physical capacity)."""
    try:
        cap = int(pltpu.get_tpu_info().vmem_capacity_bytes)
    except Exception:
        cap = 64 << 20  # v7x-safe default if the query is unavailable
    return max((cap * 3) // 4, 32 << 20)


def _mlp_fused_kernel(x_ref, *refs, num_layers):
    """Fused MLP forward for one batch tile.

    refs = (w0, b0, w1, b1, ..., w_{L-1}, b_{L-1}, o_ref).
    The running activation is chained through jnp values, so it lives in
    vregs/VMEM for the whole layer stack -- no HBM round-trips.
    """
    o_ref = refs[2 * num_layers]
    y = x_ref[...]                                   # bf16 tile
    for i in range(num_layers):
        w = refs[2 * i][...]                         # bf16 (Din_pad, Dout_pad)
        b = refs[2 * i + 1][...]                     # f32  (1, Dout_pad)
        # bf16 MXU matmul with f32 accumulation; f32 bias+ReLU epilogue (free
        # VPU filler under MXU/DMA slack, and v5e has no bf16 VPU anyway).
        y = jnp.dot(y.astype(jnp.bfloat16), w,
                    preferred_element_type=jnp.float32) + b
        if i < num_layers - 1:
            y = jnp.maximum(y, 0.0)
    o_ref[...] = y.astype(o_ref.dtype)


def mlp_forward_pallas(x_pad, params_pad, out_dim_pad, tm, *,
                       true_batch, true_dims, weight_bytes, vmem_budget):
    """x_pad: (B_pad, Din_pad) bf16; params_pad: [(w bf16 (Din,Dout), b f32 (1,Dout))]."""
    B_pad, Din_pad = x_pad.shape
    num_layers = len(params_pad)
    grid = (B_pad // tm,)

    def _build_in_specs(single_buffer_weights):
        in_specs = [pl.BlockSpec((tm, Din_pad), lambda i: (i, 0))]
        for (w, b) in params_pad:
            din, dout = w.shape
            kw = {}
            if single_buffer_weights:
                # Constant index_map -> double-buffering these is pure waste.
                kw = dict(pipeline_mode=pl.Buffered(1))
            in_specs.append(pl.BlockSpec((din, dout), lambda i: (0, 0), **kw))
            in_specs.append(pl.BlockSpec((1, dout), lambda i: (0, 0), **kw))
        return in_specs

    flat_params = []
    for (w, b) in params_pad:
        flat_params += [w, b]

    # Unpadded cost estimate (bf16 activations/weights, f32 bias/output).
    flops = 0
    bytes_accessed = true_batch * true_dims[0] * 2 + true_batch * true_dims[-1] * 4
    for din, dout in zip(true_dims[:-1], true_dims[1:]):
        flops += 2 * true_batch * din * dout
        bytes_accessed += din * dout * 2 + dout * 4

    out_specs = pl.BlockSpec((tm, out_dim_pad), lambda i: (i, 0))
    kernel = functools.partial(_mlp_fused_kernel, num_layers=num_layers)

    # VMEM need: double-buffered bf16 x tile + double-buffered f32 out tile +
    # widest intermediate activation (f32 value + bf16 recast) + resident weights.
    max_dim_pad = max([Din_pad] + [w.shape[1] for (w, _) in params_pad])
    needed = (2 * tm * Din_pad * 2
              + 2 * tm * out_dim_pad * 4
              + 6 * tm * max_dim_pad
              + weight_bytes)
    vmem_limit = int(min(max(needed + (4 << 20), 16 << 20), vmem_budget))

    def _call(single_buffer_weights):
        return pl.pallas_call(
            kernel,
            out_shape=jax.ShapeDtypeStruct((B_pad, out_dim_pad), jnp.float32),
            grid=grid,
            in_specs=_build_in_specs(single_buffer_weights),
            out_specs=out_specs,
            compiler_params=pltpu.CompilerParams(
                dimension_semantics=("parallel",),
                vmem_limit_bytes=vmem_limit,
            ),
            cost_estimate=pl.CostEstimate(
                flops=flops, transcendentals=0, bytes_accessed=bytes_accessed),
        )(x_pad, *flat_params)

    try:
        return _call(True)
    except Exception:
        # Fallback if this jax version rejects Buffered(1) as a pipeline_mode.
        return _call(False)


class MLP:
    """JAX/Pallas port of the PyTorch MLP (BN=False)."""

    def __init__(self, input_dim, hidden_dim, output_dim, num_layers, key):
        self.num_layers = num_layers
        self.input_dim = input_dim
        self.output_dim = output_dim
        h = [hidden_dim] * (num_layers - 1)
        dims_in = [input_dim] + h
        dims_out = h + [output_dim]
        self.true_dims = [input_dim] + h + [output_dim]

        self.params = []       # un-padded f32 (in, out) weights / (1, out) biases (reference)
        self.params_pad = []   # lane-padded bf16 weights + f32 biases for the kernel
        for n, k in zip(dims_in, dims_out):
            key, wk, bk = jax.random.split(key, 3)
            # Deterministic init (Kaiming-uniform-ish like torch.nn.Linear).
            bound = 1.0 / (n ** 0.5)
            w = jax.random.uniform(wk, (k, n), jnp.float32, -bound, bound)  # (out, in)
            b = jax.random.uniform(bk, (k,), jnp.float32, -bound, bound)
            w_t = w.T                                   # (in, out) for y = x @ W
            b_row = b.reshape(1, k)
            self.params.append((w_t, b_row))

            n_pad = _round_up(n, _LANE)
            k_pad = _round_up(k, _LANE)
            w_pad = jnp.zeros((n_pad, k_pad), jnp.float32).at[:n, :k].set(w_t)
            b_pad = jnp.zeros((1, k_pad), jnp.float32).at[:, :k].set(b_row)
            self.params_pad.append((w_pad.astype(jnp.bfloat16), b_pad))

        self.input_dim_pad = _round_up(input_dim, _LANE)
        self.output_dim_pad = _round_up(output_dim, _LANE)
        # bf16 weights + f32 biases resident in VMEM.
        self.weight_bytes = sum(int(w.size) * 2 + int(b.size) * 4
                                for (w, b) in self.params_pad)

    def _choose_batch_tile(self, B, vmem_budget):
        """Adaptive batch tile: as large as the VMEM budget allows, >=2 tiles
        when the batch allows it (v7x megacore), minimal padding waste."""
        dims_pad = [self.input_dim_pad] + [w.shape[1] for (w, _) in self.params_pad]
        max_dim_pad = max(dims_pad)
        # Per-row VMEM bytes: 2x bf16 x rows + 2x f32 out rows + widest f32
        # intermediate activation (+ its bf16 recast).
        per_row = (2 * 2 * self.input_dim_pad
                   + 2 * 4 * self.output_dim_pad
                   + 6 * max_dim_pad)
        headroom = vmem_budget - self.weight_bytes - (4 << 20)
        tm_cap = headroom // max(per_row, 1)
        tm_cap = max(_ROW, min(1024, (int(tm_cap) // _ROW) * _ROW))

        B8 = _round_up(max(B, 1), _ROW)
        tm = min(tm_cap, B8)
        if B8 >= 2 * _ROW:
            # Guarantee grid >= 2 so v7x's second TensorCore gets work.
            tm = min(tm, _round_up(pl.cdiv(B8, 2), _ROW))
        grid_m = pl.cdiv(B8, tm)
        # Even the tiles out -> at most (_ROW - 1) * grid padded rows total.
        tm = _round_up(pl.cdiv(B8, grid_m), _ROW)
        B_pad = tm * grid_m
        return tm, B_pad

    def __call__(self, x):
        # x: (..., input_dim) -> flatten leading dims to a single batch axis.
        lead = x.shape[:-1]
        xf = x.reshape(-1, x.shape[-1]).astype(jnp.float32)
        B = xf.shape[0]

        vmem_budget = _vmem_budget_bytes()
        tm, B_pad = self._choose_batch_tile(B, vmem_budget)

        x_pad = jnp.zeros((B_pad, self.input_dim_pad), jnp.bfloat16)
        x_pad = x_pad.at[:B, : self.input_dim].set(xf.astype(jnp.bfloat16))

        out_pad = mlp_forward_pallas(
            x_pad, self.params_pad, self.output_dim_pad, tm,
            true_batch=B, true_dims=self.true_dims,
            weight_bytes=self.weight_bytes, vmem_budget=vmem_budget)
        out = out_pad[:B, : self.output_dim]
        return out.reshape(*lead, self.output_dim)


if __name__ == "__main__":
    key = jax.random.PRNGKey(0)
    key, xk, mk = jax.random.split(key, 3)

    batch, input_dim, hidden_dim, output_dim, num_layers = 8, 16, 32, 4, 3
    x = jax.random.normal(xk, (batch, input_dim), jnp.float32)

    mlp = MLP(input_dim, hidden_dim, output_dim, num_layers, mk)
    out = jax.block_until_ready(mlp(x))

    # Pure-JAX f32 reference of the same forward semantics (un-padded params).
    ref = x
    for i, (w, b) in enumerate(mlp.params):
        ref = ref @ w + b
        if i < num_layers - 1:
            ref = jnp.maximum(ref, 0.0)

    assert out.shape == (batch, output_dim)
    # Kernel runs bf16 matmul inputs with f32 accumulation -> loose tolerance
    # vs. the full-f32 reference.
    assert jnp.allclose(out, ref, atol=5e-2, rtol=5e-2), (
        float(jnp.max(jnp.abs(out - ref))))

    print("KERNEL_OK")
</pallas_src>

<mosaic_0001>
module attributes {stable_mosaic.version = 11 : i64} {
  func.func @_mlp_fused_kernel(%arg0: i32, %arg1: memref<16x128xbf16, #tpu.memory_space<vmem>>, %arg2: memref<128x128xbf16, #tpu.memory_space<vmem>>, %arg3: memref<1x128xf32, #tpu.memory_space<vmem>>, %arg4: memref<128x128xbf16, #tpu.memory_space<vmem>>, %arg5: memref<1x128xf32, #tpu.memory_space<vmem>>, %arg6: memref<128x128xbf16, #tpu.memory_space<vmem>>, %arg7: memref<1x128xf32, #tpu.memory_space<vmem>>, %arg8: memref<16x128xf32, #tpu.memory_space<vmem>>) attributes {dimension_semantics = [#tpu.dimension_semantics<parallel>], iteration_bounds = array<i64: 1>, scalar_prefetch = 0 : i64, scratch_operands = 0 : i64, tpu.core_type = #tpu.core_type<tc>, window_params = [{transform_indices = @transform_0, window_bounds = array<i64: 16, 128>}, {pipeline_mode = #tpu.pipeline_mode<synchronous>, transform_indices = @transform_1, window_bounds = array<i64: 128, 128>}, {pipeline_mode = #tpu.pipeline_mode<synchronous>, transform_indices = @transform_2, window_bounds = array<i64: 1, 128>}, {pipeline_mode = #tpu.pipeline_mode<synchronous>, transform_indices = @transform_3, window_bounds = array<i64: 128, 128>}, {pipeline_mode = #tpu.pipeline_mode<synchronous>, transform_indices = @transform_4, window_bounds = array<i64: 1, 128>}, {pipeline_mode = #tpu.pipeline_mode<synchronous>, transform_indices = @transform_5, window_bounds = array<i64: 128, 128>}, {pipeline_mode = #tpu.pipeline_mode<synchronous>, transform_indices = @transform_6, window_bounds = array<i64: 1, 128>}, {transform_indices = @transform_7, window_bounds = array<i64: 16, 128>}]} {
    %c0 = arith.constant 0 : index
    %c0_0 = arith.constant 0 : index
    %0 = vector.load %arg1[%c0, %c0_0] : memref<16x128xbf16, #tpu.memory_space<vmem>>, vector<16x128xbf16>
    %c0_1 = arith.constant 0 : index
    %c0_2 = arith.constant 0 : index
    %1 = vector.load %arg2[%c0_1, %c0_2] : memref<128x128xbf16, #tpu.memory_space<vmem>>, vector<128x128xbf16>
    %c0_3 = arith.constant 0 : index
    %c0_4 = arith.constant 0 : index
    %2 = vector.load %arg3[%c0_3, %c0_4] : memref<1x128xf32, #tpu.memory_space<vmem>>, vector<1x128xf32>
    %cst = arith.constant dense<0.000000e+00> : vector<16x128xf32>
    %3 = tpu.matmul %0, %1, %cst {dimension_numbers = #tpu.dot_dimension_numbers<[1], [0], [0], [1], [0, 0, 1, 1], [], []>} : vector<16x128xbf16>, vector<128x128xbf16>, vector<16x128xf32> -> vector<16x128xf32>
    %4 = vector.broadcast %2 : vector<1x128xf32> to vector<16x128xf32>
    %5 = arith.addf %3, %4 : vector<16x128xf32>
    %cst_5 = arith.constant 0.000000e+00 : f32
    %6 = vector.broadcast %cst_5 : f32 to vector<16x128xf32>
    %7 = arith.maximumf %5, %6 : vector<16x128xf32>
    %c0_6 = arith.constant 0 : index
    %c0_7 = arith.constant 0 : index
    %8 = vector.load %arg4[%c0_6, %c0_7] : memref<128x128xbf16, #tpu.memory_space<vmem>>, vector<128x128xbf16>
    %c0_8 = arith.constant 0 : index
    %c0_9 = arith.constant 0 : index
    %9 = vector.load %arg5[%c0_8, %c0_9] : memref<1x128xf32, #tpu.memory_space<vmem>>, vector<1x128xf32>
    %10 = arith.truncf %7 : vector<16x128xf32> to vector<16x128xbf16>
    %cst_10 = arith.constant dense<0.000000e+00> : vector<16x128xf32>
    %11 = tpu.matmul %10, %8, %cst_10 {dimension_numbers = #tpu.dot_dimension_numbers<[1], [0], [0], [1], [0, 0, 1, 1], [], []>} : vector<16x128xbf16>, vector<128x128xbf16>, vector<16x128xf32> -> vector<16x128xf32>
    %12 = vector.broadcast %9 : vector<1x128xf32> to vector<16x128xf32>
    %13 = arith.addf %11, %12 : vector<16x128xf32>
    %cst_11 = arith.constant 0.000000e+00 : f32
    %14 = vector.broadcast %cst_11 : f32 to vector<16x128xf32>
    %15 = arith.maximumf %13, %14 : vector<16x128xf32>
    %c0_12 = arith.constant 0 : index
    %c0_13 = arith.constant 0 : index
    %16 = vector.load %arg6[%c0_12, %c0_13] : memref<128x128xbf16, #tpu.memory_space<vmem>>, vector<128x128xbf16>
    %c0_14 = arith.constant 0 : index
    %c0_15 = arith.constant 0 : index
    %17 = vector.load %arg7[%c0_14, %c0_15] : memref<1x128xf32, #tpu.memory_space<vmem>>, vector<1x128xf32>
    %18 = arith.truncf %15 : vector<16x128xf32> to vector<16x128xbf16>
    %cst_16 = arith.constant dense<0.000000e+00> : vector<16x128xf32>
    %19 = tpu.matmul %18, %16, %cst_16 {dimension_numbers = #tpu.dot_dimension_numbers<[1], [0], [0], [1], [0, 0, 1, 1], [], []>} : vector<16x128xbf16>, vector<128x128xbf16>, vector<16x128xf32> -> vector<16x128xf32>
    %20 = vector.broadcast %17 : vector<1x128xf32> to vector<16x128xf32>
    %21 = arith.addf %19, %20 : vector<16x128xf32>
    %c0_17 = arith.constant 0 : index
    %c0_18 = arith.constant 0 : index
    %22 = vector.load %arg8[%c0_17, %c0_18] : memref<16x128xf32, #tpu.memory_space<vmem>>, vector<16x128xf32>
    tpu.vector_store %arg8[%c0_17, %c0_18], %21 {strides = array<i32>} : memref<16x128xf32, #tpu.memory_space<vmem>>, vector<16x128xf32>,
    return
  }
  func.func @transform_0(%arg0: i32) -> (i32, i32) {
    %c0_i32 = arith.constant 0 : i32
    %c0_i32_0 = arith.constant 0 : i32
    return %arg0, %c0_i32 : i32, i32
  }
  func.func @transform_1(%arg0: i32) -> (i32, i32) {
    %c0_i32 = arith.constant 0 : i32
    %c0_i32_0 = arith.constant 0 : i32
    %c0_i32_1 = arith.constant 0 : i32
    return %c0_i32, %c0_i32_0 : i32, i32
  }
  func.func @transform_2(%arg0: i32) -> (i32, i32) {
    %c0_i32 = arith.constant 0 : i32
    %c0_i32_0 = arith.constant 0 : i32
    %c0_i32_1 = arith.constant 0 : i32
    return %c0_i32, %c0_i32_0 : i32, i32
  }
  func.func @transform_3(%arg0: i32) -> (i32, i32) {
    %c0_i32 = arith.constant 0 : i32
    %c0_i32_0 = arith.constant 0 : i32
    %c0_i32_1 = arith.constant 0 : i32
    return %c0_i32, %c0_i32_0 : i32, i32
  }
  func.func @transform_4(%arg0: i32) -> (i32, i32) {
    %c0_i32 = arith.constant 0 : i32
    %c0_i32_0 = arith.constant 0 : i32
    %c0_i32_1 = arith.constant 0 : i32
    return %c0_i32, %c0_i32_0 : i32, i32
  }
  func.func @transform_5(%arg0: i32) -> (i32, i32) {
    %c0_i32 = arith.constant 0 : i32
    %c0_i32_0 = arith.constant 0 : i32
    %c0_i32_1 = arith.constant 0 : i32
    return %c0_i32, %c0_i32_0 : i32, i32
  }
  func.func @transform_6(%arg0: i32) -> (i32, i32) {
    %c0_i32 = arith.constant 0 : i32
    %c0_i32_0 = arith.constant 0 : i32
    %c0_i32_1 = arith.constant 0 : i32
    return %c0_i32, %c0_i32_0 : i32, i32
  }
  func.func @transform_7(%arg0: i32) -> (i32, i32) {
    %c0_i32 = arith.constant 0 : i32
    %c0_i32_0 = arith.constant 0 : i32
    return %arg0, %c0_i32 : i32, i32
  }
}

module attributes {stable_mosaic.version = 11 : i64} {
  func.func @_mlp_fused_kernel(%arg0: i32, %arg1: memref<16x128xbf16, #tpu.memory_space<vmem>>, %arg2: memref<128x128xbf16, #tpu.memory_space<vmem>>, %arg3: memref<1x128xf32, #tpu.memory_space<vmem>>, %arg4: memref<128x128xbf16, #tpu.memory_space<vmem>>, %arg5: memref<1x128xf32, #tpu.memory_space<vmem>>, %arg6: memref<128x128xbf16, #tpu.memory_space<vmem>>, %arg7: memref<1x128xf32, #tpu.memory_space<vmem>>, %arg8: memref<16x128xf32, #tpu.memory_space<vmem>>) attributes {dimension_semantics = [#tpu.dimension_semantics<parallel>], iteration_bounds = array<i64: 1>, scalar_prefetch = 0 : i64, scratch_operands = 0 : i64, tpu.core_type = #tpu.core_type<tc>, window_params = [{transform_indices = @transform_0, window_bounds = array<i64: 16, 128>}, {pipeline_mode = #tpu.pipeline_mode<synchronous>, transform_indices = @transform_1, window_bounds = array<i64: 128, 128>}, {pipeline_mode = #tpu.pipeline_mode<synchronous>, transform_indices = @transform_2, window_bounds = array<i64: 1, 128>}, {pipeline_mode = #tpu.pipeline_mode<synchronous>, transform_indices = @transform_3, window_bounds = array<i64: 128, 128>}, {pipeline_mode = #tpu.pipeline_mode<synchronous>, transform_indices = @transform_4, window_bounds = array<i64: 1, 128>}, {pipeline_mode = #tpu.pipeline_mode<synchronous>, transform_indices = @transform_5, window_bounds = array<i64: 128, 128>}, {pipeline_mode = #tpu.pipeline_mode<synchronous>, transform_indices = @transform_6, window_bounds = array<i64: 1, 128>}, {transform_indices = @transform_7, window_bounds = array<i64: 16, 128>}]} {
    %c0 = arith.constant 0 : index
    %c0_0 = arith.constant 0 : index
    %0 = vector.load %arg1[%c0, %c0_0] : memref<16x128xbf16, #tpu.memory_space<vmem>>, vector<16x128xbf16>
    %c0_1 = arith.constant 0 : index
    %c0_2 = arith.constant 0 : index
    %1 = vector.load %arg2[%c0_1, %c0_2] : memref<128x128xbf16, #tpu.memory_space<vmem>>, vector<128x128xbf16>
    %c0_3 = arith.constant 0 : index
    %c0_4 = arith.constant 0 : index
    %2 = vector.load %arg3[%c0_3, %c0_4] : memref<1x128xf32, #tpu.memory_space<vmem>>, vector<1x128xf32>
    %cst = arith.constant dense<0.000000e+00> : vector<16x128xf32>
    %3 = tpu.matmul %0, %1, %cst {dimension_numbers = #tpu.dot_dimension_numbers<[1], [0], [0], [1], [0, 0, 1, 1], [], []>} : vector<16x128xbf16>, vector<128x128xbf16>, vector<16x128xf32> -> vector<16x128xf32>
    %4 = vector.broadcast %2 : vector<1x128xf32> to vector<16x128xf32>
    %5 = arith.addf %3, %4 : vector<16x128xf32>
    %cst_5 = arith.constant 0.000000e+00 : f32
    %6 = vector.broadcast %cst_5 : f32 to vector<16x128xf32>
    %7 = arith.maximumf %5, %6 : vector<16x128xf32>
    %c0_6 = arith.constant 0 : index
    %c0_7 = arith.constant 0 : index
    %8 = vector.load %arg4[%c0_6, %c0_7] : memref<128x128xbf16, #tpu.memory_space<vmem>>, vector<128x128xbf16>
    %c0_8 = arith.constant 0 : index
    %c0_9 = arith.constant 0 : index
    %9 = vector.load %arg5[%c0_8, %c0_9] : memref<1x128xf32, #tpu.memory_space<vmem>>, vector<1x128xf32>
    %10 = arith.truncf %7 : vector<16x128xf32> to vector<16x128xbf16>
    %cst_10 = arith.constant dense<0.000000e+00> : vector<16x128xf32>
    %11 = tpu.matmul %10, %8, %cst_10 {dimension_numbers = #tpu.dot_dimension_numbers<[1], [0], [0], [1], [0, 0, 1, 1], [], []>} : vector<16x128xbf16>, vector<128x128xbf16>, vector<16x128xf32> -> vector<16x128xf32>
    %12 = vector.broadcast %9 : vector<1x128xf32> to vector<16x128xf32>
    %13 = arith.addf %11, %12 : vector<16x128xf32>
    %cst_11 = arith.constant 0.000000e+00 : f32
    %14 = vector.broadcast %cst_11 : f32 to vector<16x128xf32>
    %15 = arith.maximumf %13, %14 : vector<16x128xf32>
    %c0_12 = arith.constant 0 : index
    %c0_13 = arith.constant 0 : index
    %16 = vector.load %arg6[%c0_12, %c0_13] : memref<128x128xbf16, #tpu.memory_space<vmem>>, vector<128x128xbf16>
    %c0_14 = arith.constant 0 : index
    %c0_15 = arith.constant 0 : index
    %17 = vector.load %arg7[%c0_14, %c0_15] : memref<1x128xf32, #tpu.memory_space<vmem>>, vector<1x128xf32>
    %18 = arith.truncf %15 : vector<16x128xf32> to vector<16x128xbf16>
    %cst_16 = arith.constant dense<0.000000e+00> : vector<16x128xf32>
    %19 = tpu.matmul %18, %16, %cst_16 {dimension_numbers = #tpu.dot_dimension_numbers<[1], [0], [0], [1], [0, 0, 1, 1], [], []>} : vector<16x128xbf16>, vector<128x128xbf16>, vector<16x128xf32> -> vector<16x128xf32>
    %20 = vector.broadcast %17 : vector<1x128xf32> to vector<16x128xf32>
    %21 = arith.addf %19, %20 : vector<16x128xf32>
    %c0_17 = arith.constant 0 : index
    %c0_18 = arith.constant 0 : index
    %22 = vector.load %arg8[%c0_17, %c0_18] : memref<16x128xf32, #tpu.memory_space<vmem>>, vector<16x128xf32>
    tpu.vector_store %arg8[%c0_17, %c0_18], %21 {strides = array<i32>} : memref<16x128xf32, #tpu.memory_space<vmem>>, vector<16x128xf32>,
    return
  }
  func.func @transform_0(%arg0: i32) -> (i32, i32) {
    %c0_i32 = arith.constant 0 : i32
    %c0_i32_0 = arith.constant 0 : i32
    return %arg0, %c0_i32 : i32, i32
  }
  func.func @transform_1(%arg0: i32) -> (i32, i32) {
    %c0_i32 = arith.constant 0 : i32
    %c0_i32_0 = arith.constant 0 : i32
    %c0_i32_1 = arith.constant 0 : i32
    return %c0_i32, %c0_i32_0 : i32, i32
  }
  func.func @transform_2(%arg0: i32) -> (i32, i32) {
    %c0_i32 = arith.constant 0 : i32
    %c0_i32_0 = arith.constant 0 : i32
    %c0_i32_1 = arith.constant 0 : i32
    return %c0_i32, %c0_i32_0 : i32, i32
  }
  func.func @transform_3(%arg0: i32) -> (i32, i32) {
    %c0_i32 = arith.constant 0 : i32
    %c0_i32_0 = arith.constant 0 : i32
    %c0_i32_1 = arith.constant 0 : i32
    return %c0_i32, %c0_i32_0 : i32, i32
  }
  func.func @transform_4(%arg0: i32) -> (i32, i32) {
    %c0_i32 = arith.constant 0 : i32
    %c0_i32_0 = arith.constant 0 : i32
    %c0_i32_1 = arith.constant 0 : i32
    return %c0_i32, %c0_i32_0 : i32, i32
  }
  func.func @transform_5(%arg0: i32) -> (i32, i32) {
    %c0_i32 = arith.constant 0 : i32
    %c0_i32_0 = arith.constant 0 : i32
    %c0_i32_1 = arith.constant 0 : i32
    return %c0_i32, %c0_i32_0 : i32, i32
  }
  func.func @transform_6(%arg0: i32) -> (i32, i32) {
    %c0_i32 = arith.constant 0 : i32
    %c0_i32_0 = arith.constant 0 : i32
    %c0_i32_1 = arith.constant 0 : i32
    return %c0_i32, %c0_i32_0 : i32, i32
  }
  func.func @transform_7(%arg0: i32) -> (i32, i32) {
    %c0_i32 = arith.constant 0 : i32
    %c0_i32_0 = arith.constant 0 : i32
    return %arg0, %c0_i32 : i32, i32
  }
}

</mosaic_0001>

<bundles_post_ra>
// kernel: tpu_custom_call.1
= control target key start
LH: loop header
LB: loop body
LE: loop exit
PB: predicated region body
PF: predicated region fallthrough
CT: control target
= control target key end

     0   :  { %12 = vsyncpa [#allocation3], 0  ;;  %s830_s0 = inlined_call_operand.hbm [shape: bf16[16,128], index: 0, kind: input, shape index: {}]   ;;  %s831_s1 = inlined_call_operand.hbm [shape: bf16[128,128], index: 1, kind: input, shape index: {}]   ;;  %s832_s2 = inlined_call_operand.vmem [shape: f32[1,128], index: 2, kind: input, shape index: {}]   ;;  %s833_s3 = inlined_call_operand.hbm [shape: bf16[128,128], index: 3, kind: input, shape index: {}]   ;;  %s834_s4 = inlined_call_operand.vmem [shape: f32[1,128], index: 4, kind: input, shape index: {}]   ;;  %s835_s5 = inlined_call_operand.hbm [shape: bf16[128,128], index: 5, kind: input, shape index: {}]   ;;  %s836_s6 = inlined_call_operand.vmem [shape: f32[1,128], index: 6, kind: input, shape index: {}]   ;;  %s837_s7 = inlined_call_operand.hbm [shape: f32[16,128], index: 7, kind: output, shape index: {}]  }
   0x1   :  { %13 = vsyncpa [#allocation6], 0 }
   0x2   :  { %14 = vsyncpa [#allocation9], 0 }
   0x3   :  { %15 = vsyncpa [#allocation4], 0  ;;  %s713_s24 = smov [#allocation5]   ;;  %s714_s26 = smov [#allocation2]  }
   0x4   :  { %s33_s25 = sshll.u32 %s713_s24, 4  ;;  %s21_s27 = sshll.u32 %s714_s26, 4  ;;  %s34_s25 = int_to_ptr.vmem [resolvable:$true] %s33_s25  ;;  %s22_s27 = int_to_ptr.vmem [resolvable:$true] %s21_s27 }
   0x5   :  { %s613_s28 = scalar_lea.vmem %s34_s25, 1024  ;;  %p618_p1 = scmp.lt.s32.totalorder %s34_s25, %s34_s25 }
   0x6   :  { %p614_p0 = scmp.ne.s32.totalorder %s34_s25, %s613_s28  ;;  %p619_p2 = scmp.lt.s32.totalorder %s613_s28, %s613_s28 }
   0x8   :  { %p620_p3 = por %p619_p2, %p618_p1 }
   0xa   :  { %p621_p4 = pnand %p620_p3, %p614_p0 }
   0xc   :  { %624 = shalt.err (!%p621_p4)
}
   0xd   :  { %s715_s29 = smov 64   ;;  %s716_s30 = smov 4  }
   0xe   :  { %39 = dma.hbm_to_vmem [thread:$0]  %s831_s1, 1024, %s34_s25, [#allocation6], %s715_s29, %s715_s29, %s716_s30  }
   0xf   :  { %s633_s10 = scalar_lea.vmem %s22_s27, 128  ;;  %p638_p6 = scmp.lt.s32.totalorder %s22_s27, %s22_s27 }
  0x10   :  { %p634_p5 = scmp.ne.s32.totalorder %s22_s27, %s633_s10  ;;  %p639_p7 = scmp.lt.s32.totalorder %s633_s10, %s633_s10 }
  0x12   :  { %p640_p8 = por %p639_p7, %p638_p6 }
  0x14   :  { %p641_p9 = pnand %p640_p8, %p634_p5 }
  0x16   :  { %644 = shalt.err (!%p641_p9)
}
  0x17   :  { %27 = dma.hbm_to_vmem [thread:$0]  %s830_s0, 128, %s22_s27, [#allocation3], %s715_s29, %s715_s29, %s716_s30  }
  0x18   :  { %s717_s13 = smov [#allocation7]   ;;  %s718_s15 = smov [#allocation8]  }
  0x19   :  { %s47_s14 = sshll.u32 %s717_s13, 4  ;;  %s61_s16 = sshll.u32 %s718_s15, 4  ;;  %s48_s14 = int_to_ptr.vmem [resolvable:$true] %s47_s14  ;;  %s62_s16 = int_to_ptr.vmem [resolvable:$true] %s61_s16 }
  0x1a   :  { %s653_s1 = scalar_lea.vmem %s48_s14, 1024  ;;  %p658_p11 = scmp.lt.s32.totalorder %s48_s14, %s48_s14 }
  0x1b   :  { %p654_p10 = scmp.ne.s32.totalorder %s48_s14, %s653_s1  ;;  %p659_p12 = scmp.lt.s32.totalorder %s653_s1, %s653_s1 }
  0x1d   :  { %p660_p13 = por %p659_p12, %p658_p11 }
  0x1f   :  { %p661_p0 = pnand %p660_p13, %p654_p10 }
  0x21   :  { %664 = shalt.err (!%p661_p0)
}
  0x22   :  { %53 = dma.hbm_to_vmem [thread:$0]  %s833_s3, 1024, %s48_s14, [#allocation6], %s715_s29, %s715_s29, %s716_s30  }
  0x23   :  { %s673_s0 = scalar_lea.vmem %s62_s16, 1024  ;;  %p678_p2 = scmp.lt.s32.totalorder %s62_s16, %s62_s16 }
  0x24   :  { %p674_p1 = scmp.ne.s32.totalorder %s62_s16, %s673_s0  ;;  %p679_p3 = scmp.lt.s32.totalorder %s673_s0, %s673_s0 }
  0x26   :  { %p680_p4 = por %p679_p3, %p678_p2 }
  0x28   :  { %p681_p5 = pnand %p680_p4, %p674_p1 }
  0x2a   :  { %684 = shalt.err (!%p681_p5)
}
  0x2b   :  { %67 = dma.hbm_to_vmem [thread:$0]  %s835_s5, 1024, %s62_s16, [#allocation9], %s715_s29, %s715_s29, %s716_s30  }
  0x2c   :  { %705 = dma.done.wait [#allocation3], 128  }
  0x2d   :  { %706 = vsyncadd [#allocation3], 4294967168 }
  0x2e   :  { %707 = dma.done.wait [#allocation6], 2048  }
  0x2f   :  { %708 = vsyncadd [#allocation6], 4294965248 }
  0x30   :  { %709 = dma.done.wait [#allocation9], 1024  }
  0x31   :  { %710 = vsyncadd [#allocation9], 4294966272  ;;  %v719_v0 = vmov 0.0   ;;  %vm720_vm0 = vmmov 0   ;;  %v580_v1 = vld [vmem:[#allocation5 + $0x38] sm:$0xff]   ;;  %v581_v2 = vld [vmem:[#allocation5 + $0x30] sm:$0xff]  }
  0x32   :  { %509 = vmatprep.subr.bf16.mxu0 %v719_v0  ;;  %525 = vmatprep.mubr.msk.bf16.mxu0 %vm720_vm0, %v719_v0  ;;  %v582_v3 = vld [vmem:[#allocation5 + $0x28] sm:$0xff]   ;;  %v589_v4 = vld [vmem:[#allocation7 + $0x38] sm:$0xff]   ;;  %v583_v5 = vld [vmem:[#allocation5 + $0x20] sm:$0xff]   ;;  %s721_s24 = smov [#allocation10]  }
  0x33   :  { %529 = vmatprep.subr.bf16.mxu1 %v719_v0  ;;  %545 = vmatprep.mubr.msk.bf16.mxu1 %vm720_vm0, %v719_v0  ;;  %v590_v6 = vld [vmem:[#allocation7 + $0x30] sm:$0xff]   ;;  %v584_v7 = vld [vmem:[#allocation5 + $0x18] sm:$0xff]   ;;  %v591_v8 = vld [vmem:[#allocation7 + $0x28] sm:$0xff]   ;;  %s440_s25 = sshll.u32 %s721_s24, 4  ;;  %s441_s25 = int_to_ptr.vmem [resolvable:$true] %s440_s25 }
  0x34   :  { %510 = vmatpush3.bf16.msra.mxu0 %v580_v1  ;;  %530 = vmatpush3.bf16.msra.mxu1 %v589_v4  ;;  %v585_v9 = vld [vmem:[#allocation5 + $0x10] sm:$0xff]   ;;  %v592_v10 = vld [vmem:[#allocation7 + $0x20] sm:$0xff]   ;;  %v586_v11 = vld [vmem:[#allocation5 + $0x8] sm:$0xff]   ;;  %p690_p7 = scmp.lt.s32.totalorder %s441_s25, %s441_s25 }
  0x35   :  { %511 = vmatprep.subr.bf16.mxu0 %v719_v0  ;;  %531 = vmatprep.subr.bf16.mxu1 %v719_v0  ;;  %v593_v12 = vld [vmem:[#allocation7 + $0x18] sm:$0xff]   ;;  %v587_v13 = vld [vmem:[#allocation5] sm:$0xff]   ;;  %v594_v15 = vld [vmem:[#allocation7 + $0x10] sm:$0xff]  }
  0x36   :  { %v588_v14 = vld [vmem:[#allocation2] sm:$0xff]   ;;  %v595_v16 = vld [vmem:[#allocation7 + $0x8] sm:$0xff]   ;;  %v596_v17 = vld [vmem:[#allocation7] sm:$0xff]  }
  0x37   :  { %v597_v18 = vld [vmem:[#allocation8 + $0x38] sm:$0xff]   ;;  %v598_v19 = vld [vmem:[#allocation8 + $0x30] sm:$0xff]   ;;  %v599_v20 = vld [vmem:[#allocation8 + $0x28] sm:$0xff]  }
  0x38   :  { %512 = vmatpush3.bf16.msra.mxu0 %v581_v2  ;;  %532 = vmatpush3.bf16.msra.mxu1 %v590_v6  ;;  %v600_v21 = vld [vmem:[#allocation8 + $0x20] sm:$0xff]   ;;  %v601_v22 = vld [vmem:[#allocation8 + $0x18] sm:$0xff]   ;;  %v602_v33 = vld [vmem:[#allocation8 + $0x10] sm:$0xff]  }
  0x39   :  { %513 = vmatprep.subr.bf16.mxu0 %v719_v0  ;;  %533 = vmatprep.subr.bf16.mxu1 %v719_v0  ;;  %v454_v23 = vld [vmem:[%s832_s2] ss:$0 sm:$0xff]  ;;  %v603_v34 = vld [vmem:[#allocation8 + $0x8] sm:$0xff]   ;;  %v604_v35 = vld [vmem:[#allocation8] sm:$0xff]  }
  0x3a   :  { %v464_v36 = vld [vmem:[%s834_s4] ss:$0 sm:$0xff]  ;;  %s685_s4 = scalar_lea.vmem %s441_s25, 256 }
  0x3b   :  { %v473_v46 = vld [vmem:[%s836_s6] ss:$0 sm:$0xff]  ;;  %p686_p6 = scmp.ne.s32.totalorder %s441_s25, %s685_s4  ;;  %p691_p8 = scmp.lt.s32.totalorder %s685_s4, %s685_s4 }
  0x3c   :  { %514 = vmatpush3.bf16.msra.mxu0 %v582_v3  ;;  %534 = vmatpush3.bf16.msra.mxu1 %v591_v8 }
  0x3d   :  { %515 = vmatprep.subr.bf16.mxu0 %v719_v0  ;;  %535 = vmatprep.subr.bf16.mxu1 %v719_v0  ;;  %p692_p9 = por %p691_p8, %p690_p7 }
  0x3f   :  { %p693_p10 = pnand %p692_p9, %p686_p6 }
  0x40   :  { %516 = vmatpush3.bf16.msra.mxu0 %v583_v5  ;;  %536 = vmatpush3.bf16.msra.mxu1 %v592_v10 }
  0x41   :  { %517 = vmatprep.subr.bf16.mxu0 %v719_v0  ;;  %537 = vmatprep.subr.bf16.mxu1 %v719_v0 }
  0x44   :  { %518 = vmatpush3.bf16.msra.mxu0 %v584_v7  ;;  %538 = vmatpush3.bf16.msra.mxu1 %v593_v12 }
  0x45   :  { %519 = vmatprep.subr.bf16.mxu0 %v719_v0  ;;  %539 = vmatprep.subr.bf16.mxu1 %v719_v0 }
  0x48   :  { %520 = vmatpush3.bf16.msra.mxu0 %v585_v9  ;;  %540 = vmatpush3.bf16.msra.mxu1 %v594_v15 }
  0x49   :  { %521 = vmatprep.subr.bf16.mxu0 %v719_v0  ;;  %541 = vmatprep.subr.bf16.mxu1 %v719_v0 }
  0x4c   :  { %522 = vmatpush3.bf16.msra.mxu0 %v586_v11  ;;  %542 = vmatpush3.bf16.msra.mxu1 %v595_v16 }
  0x4d   :  { %523 = vmatprep.subr.bf16.mxu0 %v719_v0  ;;  %543 = vmatprep.subr.bf16.mxu1 %v719_v0 }
  0x50   :  { %524 = vmatpush3.bf16.msra.mxu0 %v587_v13  ;;  %544 = vmatpush3.bf16.msra.mxu1 %v596_v17 }
  0x51   :  { %549 = vmatprep.subr.bf16.mxu0 %v719_v0 }
  0x53   :  { %526 = vmatmul.mubr.bf16.vlgmr.msra.gmra.mxu0 %v588_v14 }
  0x54   :  { %565 = vmatprep.mubr.msk.bf16.mxu0 %vm720_vm0, %v719_v0  ;;  %550 = vmatpush3.bf16.msra.mxu0 %v597_v18 }
  0x55   :  { %551 = vmatprep.subr.bf16.mxu0 %v719_v0 }
  0x58   :  { %552 = vmatpush3.bf16.msra.mxu0 %v598_v19 }
  0x59   :  { %553 = vmatprep.subr.bf16.mxu0 %v719_v0 }
  0x5c   :  { %554 = vmatpush3.bf16.msra.mxu0 %v599_v20 }
  0x5d   :  { %555 = vmatprep.subr.bf16.mxu0 %v719_v0 }
  0x60   :  { %556 = vmatpush3.bf16.msra.mxu0 %v600_v21 }
  0x61   :  { %557 = vmatprep.subr.bf16.mxu0 %v719_v0 }
  0x64   :  { %558 = vmatpush3.bf16.msra.mxu0 %v601_v22 }
  0x65   :  { %559 = vmatprep.subr.bf16.mxu0 %v719_v0 }
  0x68   :  { %560 = vmatpush3.bf16.msra.mxu0 %v602_v33 }
  0x69   :  { %561 = vmatprep.subr.bf16.mxu0 %v719_v0 }
  0x6c   :  { %562 = vmatpush3.bf16.msra.mxu0 %v603_v34 }
  0x6d   :  { %563 = vmatprep.subr.bf16.mxu0 %v719_v0 }
  0x70   :  { %564 = vmatpush3.bf16.msra.mxu0 %v604_v35 }
 0x113   :  { %v196_v24 = vpop.f32.mrf.mxu0 }
 0x114   :  { %v197_v26 = vadd.f32 %v454_v23, %v196_v24 }
 0x115   :  { %v527_v25 = vpop.f32.mrf.mxu0 }
 0x116   :  { %v203_v30 = vmax.f32 %v197_v26, 0.0 }
 0x117   :  { %v199_v27 = vpop.f32.mrf.mxu0 }
 0x118   :  { %v200_v28 = vadd.f32 %v454_v23, %v199_v27 }
 0x119   :  { %v528_v29 = vpop.f32.mrf.mxu0 }
 0x11a   :  { %v204_v31 = vmax.f32 %v200_v28, 0.0 }
 0x11c   :  { %v222_v32 = vpack.c.bf16 %v204_v31, %v203_v30 }
 0x11e   :  { %546 = vmatmul.mubr.bf16.vlgmr.msra.gmra.mxu1 %v222_v32 }
 0x1de   :  { %v311_v37 = vpop.f32.mrf.mxu1 }
 0x1df   :  { %v312_v39 = vadd.f32 %v464_v36, %v311_v37 }
 0x1e0   :  { %v547_v38 = vpop.f32.mrf.mxu1 }
 0x1e1   :  { %v318_v43 = vmax.f32 %v312_v39, 0.0 }
 0x1e2   :  { %v314_v40 = vpop.f32.mrf.mxu1 }
 0x1e3   :  { %v315_v41 = vadd.f32 %v464_v36, %v314_v40 }
 0x1e4   :  { %v548_v42 = vpop.f32.mrf.mxu1 }
 0x1e5   :  { %v319_v44 = vmax.f32 %v315_v41, 0.0 }
 0x1e7   :  { %v337_v45 = vpack.c.bf16 %v319_v44, %v318_v43 }
 0x1e9   :  { %566 = vmatmul.mubr.bf16.vlgmr.msra.gmra.mxu0 %v337_v45 }
 0x2a9   :  { %v426_v47 = vpop.f32.mrf.mxu0 }
 0x2aa   :  { %v427_v48 = vadd.f32 %v473_v46, %v426_v47 }
 0x2ab   :  { %v567_v49 = vpop.f32.mrf.mxu0 }
 0x2ac   :  { %433 = vst [vmem:[#allocation10] sm:$0xff] %v427_v48 }
 0x2ad   :  { %v429_v50 = vpop.f32.mrf.mxu0 }
 0x2ae   :  { %v430_v51 = vadd.f32 %v473_v46, %v429_v50 }
 0x2af   :  { %v568_v52 = vpop.f32.mrf.mxu0 }
 0x2b0   :  { %434 = vst [vmem:[#allocation10 + $0x8] sm:$0xff] %v430_v51 }
 0x2b1   :  { %696 = shalt.err (!%p693_p10)
}
 0x2b2   :  { %s722_s26 = smov 128   ;;  %s723_s6 = smov 8  }
 0x2b3   :  { %446 = dma.vmem_to_hbm [thread:$0]  %s441_s25, 256, %s837_s7, [#allocation4], %s722_s26, %s722_s26, %s723_s6  }
 0x2b4   :  { %711 = dma.done.wait [#allocation4], 256  }
 0x2b5   :  { %712 = vsyncadd [#allocation4], 4294967040 }
 0x2b6   :  { %450 = vsyncpa [#allocation3], 1 }
 0x2b7   :  { %451 = vsyncpa [#allocation6], 1 }
 0x2b8   :  { %452 = vsyncpa [#allocation9], 1 }
 0x2b9   :  { %453 = vsyncpa [#allocation4], 1 }

// kernel: tpu_custom_call.1
= control target key start
LH: loop header
LB: loop body
LE: loop exit
PB: predicated region body
PF: predicated region fallthrough
CT: control target
= control target key end

     0   :  { %12 = vsyncpa [#allocation3], 0  ;;  %s830_s0 = inlined_call_operand.hbm [shape: bf16[16,128], index: 0, kind: input, shape index: {}]   ;;  %s831_s1 = inlined_call_operand.hbm [shape: bf16[128,128], index: 1, kind: input, shape index: {}]   ;;  %s832_s2 = inlined_call_operand.vmem [shape: f32[1,128], index: 2, kind: input, shape index: {}]   ;;  %s833_s3 = inlined_call_operand.hbm [shape: bf16[128,128], index: 3, kind: input, shape index: {}]   ;;  %s834_s4 = inlined_call_operand.vmem [shape: f32[1,128], index: 4, kind: input, shape index: {}]   ;;  %s835_s5 = inlined_call_operand.hbm [shape: bf16[128,128], index: 5, kind: input, shape index: {}]   ;;  %s836_s6 = inlined_call_operand.vmem [shape: f32[1,128], index: 6, kind: input, shape index: {}]   ;;  %s837_s7 = inlined_call_operand.hbm [shape: f32[16,128], index: 7, kind: output, shape index: {}]  }
   0x1   :  { %13 = vsyncpa [#allocation6], 0 }
   0x2   :  { %14 = vsyncpa [#allocation9], 0 }
   0x3   :  { %15 = vsyncpa [#allocation4], 0  ;;  %s713_s24 = smov [#allocation5]   ;;  %s714_s26 = smov [#allocation2]  }
   0x4   :  { %s33_s25 = sshll.u32 %s713_s24, 4  ;;  %s21_s27 = sshll.u32 %s714_s26, 4  ;;  %s34_s25 = int_to_ptr.vmem [resolvable:$true] %s33_s25  ;;  %s22_s27 = int_to_ptr.vmem [resolvable:$true] %s21_s27 }
   0x5   :  { %s613_s28 = scalar_lea.vmem %s34_s25, 1024  ;;  %p618_p1 = scmp.lt.s32.totalorder %s34_s25, %s34_s25 }
   0x6   :  { %p614_p0 = scmp.ne.s32.totalorder %s34_s25, %s613_s28  ;;  %p619_p2 = scmp.lt.s32.totalorder %s613_s28, %s613_s28 }
   0x8   :  { %p620_p3 = por %p619_p2, %p618_p1 }
   0xa   :  { %p621_p4 = pnand %p620_p3, %p614_p0 }
   0xc   :  { %624 = shalt.err (!%p621_p4)
}
   0xd   :  { %s715_s29 = smov 64   ;;  %s716_s30 = smov 4  }
   0xe   :  { %39 = dma.hbm_to_vmem [thread:$0]  %s831_s1, 1024, %s34_s25, [#allocation6], %s715_s29, %s715_s29, %s716_s30  }
   0xf   :  { %s633_s10 = scalar_lea.vmem %s22_s27, 128  ;;  %p638_p6 = scmp.lt.s32.totalorder %s22_s27, %s22_s27 }
  0x10   :  { %p634_p5 = scmp.ne.s32.totalorder %s22_s27, %s633_s10  ;;  %p639_p7 = scmp.lt.s32.totalorder %s633_s10, %s633_s10 }
  0x12   :  { %p640_p8 = por %p639_p7, %p638_p6 }
  0x14   :  { %p641_p9 = pnand %p640_p8, %p634_p5 }
  0x16   :  { %644 = shalt.err (!%p641_p9)
}
  0x17   :  { %27 = dma.hbm_to_vmem [thread:$0]  %s830_s0, 128, %s22_s27, [#allocation3], %s715_s29, %s715_s29, %s716_s30  }
  0x18   :  { %s717_s13 = smov [#allocation7]   ;;  %s718_s15 = smov [#allocation8]  }
  0x19   :  { %s47_s14 = sshll.u32 %s717_s13, 4  ;;  %s61_s16 = sshll.u32 %s718_s15, 4  ;;  %s48_s14 = int_to_ptr.vmem [resolvable:$true] %s47_s14  ;;  %s62_s16 = int_to_ptr.vmem [resolvable:$true] %s61_s16 }
  0x1a   :  { %s653_s1 = scalar_lea.vmem %s48_s14, 1024  ;;  %p658_p11 = scmp.lt.s32.totalorder %s48_s14, %s48_s14 }
  0x1b   :  { %p654_p10 = scmp.ne.s32.totalorder %s48_s14, %s653_s1  ;;  %p659_p12 = scmp.lt.s32.totalorder %s653_s1, %s653_s1 }
  0x1d   :  { %p660_p13 = por %p659_p12, %p658_p11 }
  0x1f   :  { %p661_p0 = pnand %p660_p13, %p654_p10 }
  0x21   :  { %664 = shalt.err (!%p661_p0)
}
  0x22   :  { %53 = dma.hbm_to_vmem [thread:$0]  %s833_s3, 1024, %s48_s14, [#allocation6], %s715_s29, %s715_s29, %s716_s30  }
  0x23   :  { %s673_s0 = scalar_lea.vmem %s62_s16, 1024  ;;  %p678_p2 = scmp.lt.s32.totalorder %s62_s16, %s62_s16 }
  0x24   :  { %p674_p1 = scmp.ne.s32.totalorder %s62_s16, %s673_s0  ;;  %p679_p3 = scmp.lt.s32.totalorder %s673_s0, %s673_s0 }
  0x26   :  { %p680_p4 = por %p679_p3, %p678_p2 }
  0x28   :  { %p681_p5 = pnand %p680_p4, %p674_p1 }
  0x2a   :  { %684 = shalt.err (!%p681_p5)
}
  0x2b   :  { %67 = dma.hbm_to_vmem [thread:$0]  %s835_s5, 1024, %s62_s16, [#allocation9], %s715_s29, %s715_s29, %s716_s30  }
  0x2c   :  { %705 = dma.done.wait [#allocation3], 128  }
  0x2d   :  { %706 = vsyncadd [#allocation3], 4294967168 }
  0x2e   :  { %707 = dma.done.wait [#allocation6], 2048  }
  0x2f   :  { %708 = vsyncadd [#allocation6], 4294965248 }
  0x30   :  { %709 = dma.done.wait [#allocation9], 1024  }
  0x31   :  { %710 = vsyncadd [#allocation9], 4294966272  ;;  %v719_v0 = vmov 0.0   ;;  %vm720_vm0 = vmmov 0   ;;  %v580_v1 = vld [vmem:[#allocation5 + $0x38] sm:$0xff]   ;;  %v581_v2 = vld [vmem:[#allocation5 + $0x30] sm:$0xff]  }
  0x32   :  { %509 = vmatprep.subr.bf16.mxu0 %v719_v0  ;;  %525 = vmatprep.mubr.msk.bf16.mxu0 %vm720_vm0, %v719_v0  ;;  %v582_v3 = vld [vmem:[#allocation5 + $0x28] sm:$0xff]   ;;  %v589_v4 = vld [vmem:[#allocation7 + $0x38] sm:$0xff]   ;;  %v583_v5 = vld [vmem:[#allocation5 + $0x20] sm:$0xff]   ;;  %s721_s24 = smov [#allocation10]  }
  0x33   :  { %529 = vmatprep.subr.bf16.mxu1 %v719_v0  ;;  %545 = vmatprep.mubr.msk.bf16.mxu1 %vm720_vm0, %v719_v0  ;;  %v590_v6 = vld [vmem:[#allocation7 + $0x30] sm:$0xff]   ;;  %v584_v7 = vld [vmem:[#allocation5 + $0x18] sm:$0xff]   ;;  %v591_v8 = vld [vmem:[#allocation7 + $0x28] sm:$0xff]   ;;  %s440_s25 = sshll.u32 %s721_s24, 4  ;;  %s441_s25 = int_to_ptr.vmem [resolvable:$true] %s440_s25 }
  0x34   :  { %510 = vmatpush3.bf16.msra.mxu0 %v580_v1  ;;  %530 = vmatpush3.bf16.msra.mxu1 %v589_v4  ;;  %v585_v9 = vld [vmem:[#allocation5 + $0x10] sm:$0xff]   ;;  %v592_v10 = vld [vmem:[#allocation7 + $0x20] sm:$0xff]   ;;  %v586_v11 = vld [vmem:[#allocation5 + $0x8] sm:$0xff]   ;;  %p690_p7 = scmp.lt.s32.totalorder %s441_s25, %s441_s25 }
  0x35   :  { %511 = vmatprep.subr.bf16.mxu0 %v719_v0  ;;  %531 = vmatprep.subr.bf16.mxu1 %v719_v0  ;;  %v593_v12 = vld [vmem:[#allocation7 + $0x18] sm:$0xff]   ;;  %v587_v13 = vld [vmem:[#allocation5] sm:$0xff]   ;;  %v594_v15 = vld [vmem:[#allocation7 + $0x10] sm:$0xff]  }
  0x36   :  { %v588_v14 = vld [vmem:[#allocation2] sm:$0xff]   ;;  %v595_v16 = vld [vmem:[#allocation7 + $0x8] sm:$0xff]   ;;  %v596_v17 = vld [vmem:[#allocation7] sm:$0xff]  }
  0x37   :  { %v597_v18 = vld [vmem:[#allocation8 + $0x38] sm:$0xff]   ;;  %v598_v19 = vld [vmem:[#allocation8 + $0x30] sm:$0xff]   ;;  %v599_v20 = vld [vmem:[#allocation8 + $0x28] sm:$0xff]  }
  0x38   :  { %512 = vmatpush3.bf16.msra.mxu0 %v581_v2  ;;  %532 = vmatpush3.bf16.msra.mxu1 %v590_v6  ;;  %v600_v21 = vld [vmem:[#allocation8 + $0x20] sm:$0xff]   ;;  %v601_v22 = vld [vmem:[#allocation8 + $0x18] sm:$0xff]   ;;  %v602_v33 = vld [vmem:[#allocation8 + $0x10] sm:$0xff]  }
  0x39   :  { %513 = vmatprep.subr.bf16.mxu0 %v719_v0  ;;  %533 = vmatprep.subr.bf16.mxu1 %v719_v0  ;;  %v454_v23 = vld [vmem:[%s832_s2] ss:$0 sm:$0xff]  ;;  %v603_v34 = vld [vmem:[#allocation8 + $0x8] sm:$0xff]   ;;  %v604_v35 = vld [vmem:[#allocation8] sm:$0xff]  }
  0x3a   :  { %v464_v36 = vld [vmem:[%s834_s4] ss:$0 sm:$0xff]  ;;  %s685_s4 = scalar_lea.vmem %s441_s25, 256 }
  0x3b   :  { %v473_v46 = vld [vmem:[%s836_s6] ss:$0 sm:$0xff]  ;;  %p686_p6 = scmp.ne.s32.totalorder %s441_s25, %s685_s4  ;;  %p691_p8 = scmp.lt.s32.totalorder %s685_s4, %s685_s4 }
  0x3c   :  { %514 = vmatpush3.bf16.msra.mxu0 %v582_v3  ;;  %534 = vmatpush3.bf16.msra.mxu1 %v591_v8 }
  0x3d   :  { %515 = vmatprep.subr.bf16.mxu0 %v719_v0  ;;  %535 = vmatprep.subr.bf16.mxu1 %v719_v0  ;;  %p692_p9 = por %p691_p8, %p690_p7 }
  0x3f   :  { %p693_p10 = pnand %p692_p9, %p686_p6 }
  0x40   :  { %516 = vmatpush3.bf16.msra.mxu0 %v583_v5  ;;  %536 = vmatpush3.bf16.msra.mxu1 %v592_v10 }
  0x41   :  { %517 = vmatprep.subr.bf16.mxu0 %v719_v0  ;;  %537 = vmatprep.subr.bf16.mxu1 %v719_v0 }
  0x44   :  { %518 = vmatpush3.bf16.msra.mxu0 %v584_v7  ;;  %538 = vmatpush3.bf16.msra.mxu1 %v593_v12 }
  0x45   :  { %519 = vmatprep.subr.bf16.mxu0 %v719_v0  ;;  %539 = vmatprep.subr.bf16.mxu1 %v719_v0 }
  0x48   :  { %520 = vmatpush3.bf16.msra.mxu0 %v585_v9  ;;  %540 = vmatpush3.bf16.msra.mxu1 %v594_v15 }
  0x49   :  { %521 = vmatprep.subr.bf16.mxu0 %v719_v0  ;;  %541 = vmatprep.subr.bf16.mxu1 %v719_v0 }
  0x4c   :  { %522 = vmatpush3.bf16.msra.mxu0 %v586_v11  ;;  %542 = vmatpush3.bf16.msra.mxu1 %v595_v16 }
  0x4d   :  { %523 = vmatprep.subr.bf16.mxu0 %v719_v0  ;;  %543 = vmatprep.subr.bf16.mxu1 %v719_v0 }
  0x50   :  { %524 = vmatpush3.bf16.msra.mxu0 %v587_v13  ;;  %544 = vmatpush3.bf16.msra.mxu1 %v596_v17 }
  0x51   :  { %549 = vmatprep.subr.bf16.mxu0 %v719_v0 }
  0x53   :  { %526 = vmatmul.mubr.bf16.vlgmr.msra.gmra.mxu0 %v588_v14 }
  0x54   :  { %565 = vmatprep.mubr.msk.bf16.mxu0 %vm720_vm0, %v719_v0  ;;  %550 = vmatpush3.bf16.msra.mxu0 %v597_v18 }
  0x55   :  { %551 = vmatprep.subr.bf16.mxu0 %v719_v0 }
  0x58   :  { %552 = vmatpush3.bf16.msra.mxu0 %v598_v19 }
  0x59   :  { %553 = vmatprep.subr.bf16.mxu0 %v719_v0 }
  0x5c   :  { %554 = vmatpush3.bf16.msra.mxu0 %v599_v20 }
  0x5d   :  { %555 = vmatprep.subr.bf16.mxu0 %v719_v0 }
  0x60   :  { %556 = vmatpush3.bf16.msra.mxu0 %v600_v21 }
  0x61   :  { %557 = vmatprep.subr.bf16.mxu0 %v719_v0 }
  0x64   :  { %558 = vmatpush3.bf16.msra.mxu0 %v601_v22 }
  0x65   :  { %559 = vmatprep.subr.bf16.mxu0 %v719_v0 }
  0x68   :  { %560 = vmatpush3.bf16.msra.mxu0 %v602_v33 }
  0x69   :  { %561 = vmatprep.subr.bf16.mxu0 %v719_v0 }
  0x6c   :  { %562 = vmatpush3.bf16.msra.mxu0 %v603_v34 }
  0x6d   :  { %563 = vmatprep.subr.bf16.mxu0 %v719_v0 }
  0x70   :  { %564 = vmatpush3.bf16.msra.mxu0 %v604_v35 }
 0x113   :  { %v196_v24 = vpop.f32.mrf.mxu0 }
 0x114   :  { %v197_v26 = vadd.f32 %v454_v23, %v196_v24 }
 0x115   :  { %v527_v25 = vpop.f32.mrf.mxu0 }
 0x116   :  { %v203_v30 = vmax.f32 %v197_v26, 0.0 }
 0x117   :  { %v199_v27 = vpop.f32.mrf.mxu0 }
 0x118   :  { %v200_v28 = vadd.f32 %v454_v23, %v199_v27 }
 0x119   :  { %v528_v29 = vpop.f32.mrf.mxu0 }
 0x11a   :  { %v204_v31 = vmax.f32 %v200_v28, 0.0 }
 0x11c   :  { %v222_v32 = vpack.c.bf16 %v204_v31, %v203_v30 }
 0x11e   :  { %546 = vmatmul.mubr.bf16.vlgmr.msra.gmra.mxu1 %v222_v32 }
 0x1de   :  { %v311_v37 = vpop.f32.mrf.mxu1 }
 0x1df   :  { %v312_v39 = vadd.f32 %v464_v36, %v311_v37 }
 0x1e0   :  { %v547_v38 = vpop.f32.mrf.mxu1 }
 0x1e1   :  { %v318_v43 = vmax.f32 %v312_v39, 0.0 }
 0x1e2   :  { %v314_v40 = vpop.f32.mrf.mxu1 }
 0x1e3   :  { %v315_v41 = vadd.f32 %v464_v36, %v314_v40 }
 0x1e4   :  { %v548_v42 = vpop.f32.mrf.mxu1 }
 0x1e5   :  { %v319_v44 = vmax.f32 %v315_v41, 0.0 }
 0x1e7   :  { %v337_v45 = vpack.c.bf16 %v319_v44, %v318_v43 }
 0x1e9   :  { %566 = vmatmul.mubr.bf16.vlgmr.msra.gmra.mxu0 %v337_v45 }
 0x2a9   :  { %v426_v47 = vpop.f32.mrf.mxu0 }
 0x2aa   :  { %v427_v48 = vadd.f32 %v473_v46, %v426_v47 }
 0x2ab   :  { %v567_v49 = vpop.f32.mrf.mxu0 }
 0x2ac   :  { %433 = vst [vmem:[#allocation10] sm:$0xff] %v427_v48 }
 0x2ad   :  { %v429_v50 = vpop.f32.mrf.mxu0 }
 0x2ae   :  { %v430_v51 = vadd.f32 %v473_v46, %v429_v50 }
 0x2af   :  { %v568_v52 = vpop.f32.mrf.mxu0 }
 0x2b0   :  { %434 = vst [vmem:[#allocation10 + $0x8] sm:$0xff] %v430_v51 }
 0x2b1   :  { %696 = shalt.err (!%p693_p10)
}
 0x2b2   :  { %s722_s26 = smov 128   ;;  %s723_s6 = smov 8  }
 0x2b3   :  { %446 = dma.vmem_to_hbm [thread:$0]  %s441_s25, 256, %s837_s7, [#allocation4], %s722_s26, %s722_s26, %s723_s6  }
 0x2b4   :  { %711 = dma.done.wait [#allocation4], 256  }
 0x2b5   :  { %712 = vsyncadd [#allocation4], 4294967040 }
 0x2b6   :  { %450 = vsyncpa [#allocation3], 1 }
 0x2b7   :  { %451 = vsyncpa [#allocation6], 1 }
 0x2b8   :  { %452 = vsyncpa [#allocation9], 1 }
 0x2b9   :  { %453 = vsyncpa [#allocation4], 1 }

</bundles_post_ra>
